<compile_context>
chip_gen: v5e
topology: v5e:2x2
jax: 0.10.0
libtpu: 0.0.40
codegen_flags: <defaults>
</compile_context>

<pallas_src>
import jax
import jax.numpy as jnp
from jax.experimental import pallas as pl
from jax.experimental.pallas import tpu as pltpu


_DEFAULT_BLOCK_BYTES = 2 << 20   # ~2 MiB streaming blocks: >=512 lanes already
                                 # hits ~85% of the HBM roofline; small blocks
                                 # pipeline well and shard across both v7x TCs.
_TC_MIN = 32                     # min channel tile for the halo'd path
                                 # (2 x 8-row halo => <= 50% extra read).


# ----------------------------------------------------------------------------
# VMEM budgeting helpers
# ----------------------------------------------------------------------------

def _vmem_capacity_bytes():
    """Physical VMEM per TensorCore, with a device_kind fallback."""
    try:
        info = pltpu.get_tpu_info()
        cap = getattr(info, "vmem_capacity_bytes", None)
        if cap:
            return int(cap)
    except Exception:
        pass
    try:
        kind = jax.devices()[0].device_kind.lower()
        for tag in ("v6", "v5", "v4"):      # 128 MiB / TC generations
            if tag in kind:
                return 128 * 1024 * 1024
    except Exception:
        pass
    return 64 * 1024 * 1024                 # v7x (smallest) conservative default


def _vmem_limit(needed_bytes, phys):
    # Explicit scoped-VMEM limit: at least 16 MiB (v5e's default scoped VMEM),
    # at most 3/4 of physical VMEM so Mosaic keeps internal-scratch headroom.
    return int(min(max(int(needed_bytes), 16 << 20), phys * 3 // 4))


def _buffered_spec(block_shape, index_map, depth):
    """BlockSpec with deeper multi-buffering when the API supports it."""
    buffered = getattr(pl, "Buffered", None)
    if buffered is not None:
        try:
            return pl.BlockSpec(block_shape, index_map,
                                pipeline_mode=buffered(depth))
        except TypeError:
            pass
    return pl.BlockSpec(block_shape, index_map)


# ----------------------------------------------------------------------------
# Kernel bodies
# ----------------------------------------------------------------------------

def _conv_sigmoid(m, m_lo, m_hi, w_ref, b_ref):
    """k=3 channel conv (+bias) + sigmoid on a sublane-major (1, n, 1) tile.

    m_lo / m_hi are the (1, 1, 1) pooled values of the channels immediately
    below / above this tile (zeros at the true channel boundaries).
    """
    n = m.shape[1]
    m_prev = jnp.concatenate([m_lo, m[:, :n - 1, :]], axis=1)
    m_next = jnp.concatenate([m[:, 1:, :], m_hi], axis=1)
    y = w_ref[0] * m_prev + w_ref[1] * m + w_ref[2] * m_next + b_ref[0]
    return jax.nn.sigmoid(y)                                    # f32 (1, n, 1)


def _make_fused_kernel(hw):
    """Whole-(C, HW) slab per grid step: GAP + conv + sigmoid + scale."""
    inv_hw = 1.0 / float(hw)

    def kernel(w_ref, b_ref, x_ref, o_ref):
        # Pass 1 over the VMEM block: GAP over lanes -> sublane-major (1,C,1).
        m = jnp.sum(x_ref[...].astype(jnp.float32), axis=-1,
                    keepdims=True) * inv_hw
        zero = jnp.zeros((1, 1, 1), jnp.float32)
        s = _conv_sigmoid(m, zero, zero, w_ref, b_ref)
        # Pass 2: scale in the input dtype (bf16-native VALU on v6e/v7x; f32
        # inputs keep the exact f32 multiply). s broadcasts over lanes free.
        xv = x_ref[...]
        o_ref[...] = (xv * s.astype(xv.dtype)).astype(o_ref.dtype)

    return kernel


def _make_halo_kernel(hw, C, tc):
    """C-tiled single-pass kernel: main (1,tc,HW) block + 8-row channel halos."""
    inv_hw = 1.0 / float(hw)
    ragged_c = (C % tc) != 0

    def kernel(w_ref, b_ref, x_ref, xp_ref, xn_ref, o_ref):
        c_blk = pl.program_id(1)
        n_blk = pl.num_programs(1)

        # GAP of this channel tile (f32 accumulation).
        m = jnp.sum(x_ref[...].astype(jnp.float32), axis=-1,
                    keepdims=True) * inv_hw                      # (1, tc, 1)
        if ragged_c:
            # Zero pooled values of out-of-range channels in the last block so
            # the in-block conv neighbours see the true zero padding.
            ch = c_blk * tc + jax.lax.broadcasted_iota(jnp.int32, m.shape, 1)
            m = jnp.where(ch < C, m, 0.0)

        # Halo pooled values: channel (c*tc - 1) is row 7 of the previous
        # 8-channel block, channel ((c+1)*tc) is row 0 of the next one.
        mp = jnp.sum(xp_ref[:, 7:8, :].astype(jnp.float32), axis=-1,
                     keepdims=True) * inv_hw                     # (1, 1, 1)
        mn = jnp.sum(xn_ref[:, 0:1, :].astype(jnp.float32), axis=-1,
                     keepdims=True) * inv_hw                     # (1, 1, 1)
        mp = jnp.where(c_blk > 0, mp, 0.0)
        mn = jnp.where(c_blk < n_blk - 1, mn, 0.0)

        s = _conv_sigmoid(m, mp, mn, w_ref, b_ref)               # (1, tc, 1)

        # Scale in the input dtype; s broadcasts over lanes for free.
        xv = x_ref[...]
        o_ref[...] = (xv * s.astype(xv.dtype)).astype(o_ref.dtype)

    return kernel


def _make_pool_kernel(hw, thw):
    """Two-phase fallback, phase 1: streaming GAP + conv + sigmoid."""
    inv_hw = 1.0 / float(hw)
    ragged = (hw % thw) != 0

    def kernel(w_ref, b_ref, x_ref, s_ref, acc_ref):
        t = pl.program_id(1)
        nt = pl.num_programs(1)

        @pl.when(t == 0)
        def _():
            acc_ref[...] = jnp.zeros_like(acc_ref)

        if ragged:
            # Lane masking only on the last (ragged) tile; hot body stays lean.
            @pl.when(t < nt - 1)
            def _():
                acc_ref[...] += jnp.sum(x_ref[...].astype(jnp.float32),
                                        axis=-1, keepdims=True)

            @pl.when(t == nt - 1)
            def _():
                x = x_ref[...].astype(jnp.float32)
                pos = t * thw + jax.lax.broadcasted_iota(jnp.int32, x.shape, 2)
                x = jnp.where(pos < hw, x, 0.0)
                acc_ref[...] += jnp.sum(x, axis=-1, keepdims=True)
        else:
            acc_ref[...] += jnp.sum(x_ref[...].astype(jnp.float32),
                                    axis=-1, keepdims=True)

        @pl.when(t == nt - 1)
        def _():
            m = acc_ref[...] * inv_hw
            zero = jnp.zeros((1, 1, 1), jnp.float32)
            s_ref[...] = _conv_sigmoid(m, zero, zero, w_ref, b_ref)

    return kernel


def _scale_kernel(s_ref, x_ref, o_ref):
    """Two-phase fallback, phase 2: scale by the precomputed sigmoid weights."""
    xv = x_ref[...]
    o_ref[...] = (xv * s_ref[...].astype(xv.dtype)).astype(o_ref.dtype)


# ----------------------------------------------------------------------------
# pallas_call wrappers
# ----------------------------------------------------------------------------

def _eca_fused(x_flat, conv_w, conv_b, slab_bytes, phys):
    B, C, HW = x_flat.shape
    esize = x_flat.dtype.itemsize
    return pl.pallas_call(
        _make_fused_kernel(HW),
        out_shape=jax.ShapeDtypeStruct((B, C, HW), x_flat.dtype),
        grid=(B,),
        in_specs=[
            pl.BlockSpec(memory_space=pltpu.MemorySpace.SMEM),   # conv weight (3,)
            pl.BlockSpec(memory_space=pltpu.MemorySpace.SMEM),   # conv bias (1,)
            pl.BlockSpec((1, C, HW), lambda b: (b, 0, 0)),
        ],
        out_specs=pl.BlockSpec((1, C, HW), lambda b: (b, 0, 0)),
        compiler_params=pltpu.CompilerParams(
            dimension_semantics=("parallel",),
            vmem_limit_bytes=_vmem_limit(4 * slab_bytes + (8 << 20), phys),
        ),
        cost_estimate=pl.CostEstimate(
            flops=2 * B * C * HW,
            transcendentals=B * C,
            bytes_accessed=2 * B * C * HW * esize + 16,
        ),
    )(conv_w, conv_b, x_flat)


def _eca_c_tiled(x_flat, conv_w, conv_b, tc, phys):
    B, C, HW = x_flat.shape
    esize = x_flat.dtype.itemsize
    n_c = pl.cdiv(C, tc)
    r = tc // 8                       # channel-tile size in 8-channel halo units
    n8m1 = C // 8 - 1                 # last valid 8-channel block index (C%8==0)
    block_bytes = tc * HW * esize
    halo_bytes = 8 * HW * esize
    resident = 2 * (2 * block_bytes + 2 * halo_bytes)   # double-buffered in/out/halos

    return pl.pallas_call(
        _make_halo_kernel(HW, C, tc),
        out_shape=jax.ShapeDtypeStruct((B, C, HW), x_flat.dtype),
        grid=(B, n_c),
        in_specs=[
            pl.BlockSpec(memory_space=pltpu.MemorySpace.SMEM),   # conv weight
            pl.BlockSpec(memory_space=pltpu.MemorySpace.SMEM),   # conv bias
            pl.BlockSpec((1, tc, HW), lambda b, c: (b, c, 0)),   # main tile
            pl.BlockSpec((1, 8, HW),                              # prev-channel halo
                         lambda b, c: (b, jnp.maximum(c * r - 1, 0), 0)),
            pl.BlockSpec((1, 8, HW),                              # next-channel halo
                         lambda b, c: (b, jnp.minimum((c + 1) * r, n8m1), 0)),
        ],
        out_specs=pl.BlockSpec((1, tc, HW), lambda b, c: (b, c, 0)),
        compiler_params=pltpu.CompilerParams(
            dimension_semantics=("parallel", "parallel"),
            vmem_limit_bytes=_vmem_limit(resident + (8 << 20), phys),
        ),
        cost_estimate=pl.CostEstimate(
            flops=2 * B * C * HW,
            transcendentals=B * C,
            bytes_accessed=(2 * B * C * HW + B * n_c * 16 * HW) * esize + 16,
        ),
    )(conv_w, conv_b, x_flat, x_flat, x_flat)


def _eca_two_phase(x_flat, conv_w, conv_b, target_tile_bytes, phys):
    B, C, HW = x_flat.shape
    esize = x_flat.dtype.itemsize

    # Lane-dense HW tile: multiple of 128 unless it covers the full extent;
    # capped near the target block size (bigger tiles buy nothing in steady
    # state and only hurt ramp-up / VMEM headroom).
    max_lanes = max(128, (target_tile_bytes // max(C * esize, 1)) // 128 * 128)
    thw = int(min(HW, max_lanes))
    n_t = pl.cdiv(HW, thw)
    tile_bytes = C * thw * esize

    # Phase 1: stream HW tiles, accumulate GAP, conv + sigmoid -> s (B, C, 1).
    # TODO(synk): at B == 1 only one v7x TensorCore pools here (t is a
    # reduction axis); acceptable since this path only fires when even a
    # 32-channel-row streaming block does not fit the ~2 MiB block budget.
    s = pl.pallas_call(
        _make_pool_kernel(HW, thw),
        out_shape=jax.ShapeDtypeStruct((B, C, 1), jnp.float32),
        grid=(B, n_t),
        in_specs=[
            pl.BlockSpec(memory_space=pltpu.MemorySpace.SMEM),
            pl.BlockSpec(memory_space=pltpu.MemorySpace.SMEM),
            pl.BlockSpec((1, C, thw), lambda b, t: (b, 0, t)),
        ],
        out_specs=pl.BlockSpec((1, C, 1), lambda b, t: (b, 0, 0)),
        scratch_shapes=[pltpu.VMEM((1, C, 1), jnp.float32)],
        compiler_params=pltpu.CompilerParams(
            dimension_semantics=("parallel", "arbitrary"),
            vmem_limit_bytes=_vmem_limit(4 * tile_bytes + (8 << 20), phys),
        ),
        cost_estimate=pl.CostEstimate(
            flops=B * C * HW,
            transcendentals=B * C,
            bytes_accessed=B * C * HW * esize + B * C * 4,
        ),
    )(conv_w, conv_b, x_flat)

    # Phase 2: stream HW tiles and scale by s; both axes parallel (keeps both
    # v7x TensorCores busy even at B == 1), 3-deep buffering on the x stream.
    return pl.pallas_call(
        _scale_kernel,
        out_shape=jax.ShapeDtypeStruct((B, C, HW), x_flat.dtype),
        grid=(B, n_t),
        in_specs=[
            pl.BlockSpec((1, C, 1), lambda b, t: (b, 0, 0)),
            _buffered_spec((1, C, thw), lambda b, t: (b, 0, t), 3),
        ],
        out_specs=pl.BlockSpec((1, C, thw), lambda b, t: (b, 0, t)),
        compiler_params=pltpu.CompilerParams(
            dimension_semantics=("parallel", "parallel"),
            vmem_limit_bytes=_vmem_limit(8 * tile_bytes + (8 << 20), phys),
        ),
        cost_estimate=pl.CostEstimate(
            flops=B * C * HW,
            transcendentals=0,
            bytes_accessed=2 * B * C * HW * esize + B * C * 4,
        ),
    )(s, x_flat)


# ----------------------------------------------------------------------------
# Public entry point
# ----------------------------------------------------------------------------

def eca_attention(x, conv_w, conv_b, *, block_bytes=None, full_block_bytes=None):
    """ECA forward. x: (B, C, H, W); conv_w: (3,); conv_b: (1,)."""
    B, C, H, W = x.shape
    HW = H * W
    x_flat = x.reshape(B, C, HW)
    esize = x.dtype.itemsize
    row_bytes = HW * esize
    slab_bytes = C * row_bytes

    phys = _vmem_capacity_bytes()
    tb = block_bytes if block_bytes is not None else _DEFAULT_BLOCK_BYTES
    fb = full_block_bytes if full_block_bytes is not None else phys // 8

    # Path 1: C-tiled single-pass kernel with channel halos (preferred when the
    # per-batch slab is bigger than one streaming block and C tiles by 8).
    if C % 8 == 0 and slab_bytes > tb:
        tc = min(C, (tb // row_bytes) // 8 * 8)
        if tc >= _TC_MIN:
            return _eca_c_tiled(x_flat, conv_w, conv_b, tc, phys).reshape(
                B, C, H, W)

    # Path 2: whole-(C, HW) slab per grid step (small slabs, or C % 8 != 0).
    if slab_bytes <= fb:
        return _eca_fused(x_flat, conv_w, conv_b, slab_bytes, phys).reshape(
            B, C, H, W)

    # Path 3: two-phase HW-tiled fallback (1.5x HBM traffic), VMEM-forced only.
    return _eca_two_phase(x_flat, conv_w, conv_b, tb, phys).reshape(B, C, H, W)


# ----------------------------------------------------------------------------
# Pure-JAX reference (matches the PyTorch forward)
# ----------------------------------------------------------------------------

def eca_reference(x, conv_w, conv_b):
    B, C, H, W = x.shape
    m = jnp.mean(x.astype(jnp.float32), axis=(2, 3))             # (B, C)
    mp = jnp.pad(m, ((0, 0), (1, 1)))                            # (B, C+2)
    y = (conv_w[0] * mp[:, 0:C] + conv_w[1] * mp[:, 1:C + 1]
         + conv_w[2] * mp[:, 2:C + 2] + conv_b[0])               # (B, C)
    s = jax.nn.sigmoid(y)
    return (x.astype(jnp.float32) * s[:, :, None, None]).astype(x.dtype)


if __name__ == "__main__":
    key = jax.random.PRNGKey(0)
    kx, kw, kb, kx2, kx3, kx4, kx5 = jax.random.split(key, 7)

    # Conv1d(1, 1, k=3) params: PyTorch default init is U(-sqrt(1/3), sqrt(1/3)).
    bound = (1.0 / 3.0) ** 0.5
    conv_w = jax.random.uniform(kw, (3,), minval=-bound, maxval=bound,
                                dtype=jnp.float32)
    conv_b = jax.random.uniform(kb, (1,), minval=-bound, maxval=bound,
                                dtype=jnp.float32)

    # Case 1: canonical small shape -> whole-slab fused path (C % 8 != 0).
    B, C, H, W = 2, 4, 16, 16
    x = jax.random.normal(kx, (B, C, H, W), dtype=jnp.float32)
    ref = eca_reference(x, conv_w, conv_b)
    out = jax.block_until_ready(eca_attention(x, conv_w, conv_b))
    assert out.shape == (B, C, H, W)
    assert jnp.allclose(out, ref, atol=1e-5, rtol=1e-5), "fused path mismatch"

    # Case 2: force the two-phase HW-tiled fallback on the same input.
    out2 = jax.block_until_ready(
        eca_attention(x, conv_w, conv_b, block_bytes=2048, full_block_bytes=2048))
    assert jnp.allclose(out2, ref, atol=1e-5, rtol=1e-5), "two-phase mismatch"

    # Case 3: ragged spatial extent; default (fused) and forced two-phase paths.
    x2 = jax.random.normal(kx2, (1, 8, 9, 15), dtype=jnp.float32)
    ref2 = eca_reference(x2, conv_w, conv_b)
    out3 = jax.block_until_ready(eca_attention(x2, conv_w, conv_b))
    assert jnp.allclose(out3, ref2, atol=1e-5, rtol=1e-5), "fused ragged mismatch"
    out4 = jax.block_until_ready(
        eca_attention(x2, conv_w, conv_b, block_bytes=512, full_block_bytes=2048))
    assert jnp.allclose(out4, ref2, atol=1e-5, rtol=1e-5), "two-phase ragged mismatch"

    # Case 4: C-tiled single-pass halo path (forced small streaming blocks).
    x3 = jax.random.normal(kx3, (2, 128, 8, 16), dtype=jnp.float32)
    ref3 = eca_reference(x3, conv_w, conv_b)
    out5 = jax.block_until_ready(
        eca_attention(x3, conv_w, conv_b, block_bytes=16384))
    assert jnp.allclose(out5, ref3, atol=1e-5, rtol=1e-5), "C-tiled halo mismatch"

    # Case 5: C-tiled halo path with a ragged channel tile (C % tc != 0).
    x4 = jax.random.normal(kx4, (1, 120, 8, 16), dtype=jnp.float32)
    ref4 = eca_reference(x4, conv_w, conv_b)
    out6 = jax.block_until_ready(
        eca_attention(x4, conv_w, conv_b, block_bytes=16384))
    assert jnp.allclose(out6, ref4, atol=1e-5, rtol=1e-5), "ragged-C halo mismatch"

    # Case 6: bf16 input -> bf16-native scale multiply (looser tolerance,
    # the reference multiplies in f32 before the final cast).
    x5 = jax.random.normal(kx5, (1, 64, 8, 16), dtype=jnp.bfloat16)
    ref5 = eca_reference(x5, conv_w, conv_b).astype(jnp.float32)
    out7 = jax.block_until_ready(
        eca_attention(x5, conv_w, conv_b)).astype(jnp.float32)
    assert jnp.allclose(out7, ref5, atol=5e-2, rtol=5e-2), "bf16 mismatch"

    print("KERNEL_OK")
</pallas_src>

<mosaic_0001>
module attributes {stable_mosaic.version = 11 : i64} {
  func.func @kernel(%arg0: i32, %arg1: memref<3xf32, #tpu.memory_space<smem>>, %arg2: memref<1xf32, #tpu.memory_space<smem>>, %arg3: memref<1x4x256xf32, #tpu.memory_space<vmem>>, %arg4: memref<1x4x256xf32, #tpu.memory_space<vmem>>) attributes {dimension_semantics = [#tpu.dimension_semantics<parallel>], iteration_bounds = array<i64: 2>, scalar_prefetch = 0 : i64, scratch_operands = 0 : i64, tpu.core_type = #tpu.core_type<tc>, window_params = [{transform_indices = @transform_0, window_bounds = array<i64: 3>}, {transform_indices = @transform_1, window_bounds = array<i64: 1>}, {transform_indices = @transform_2, window_bounds = array<i64: 1, 4, 256>}, {transform_indices = @transform_3, window_bounds = array<i64: 1, 4, 256>}]} {
    %c0 = arith.constant 0 : index
    %c0_0 = arith.constant 0 : index
    %c0_1 = arith.constant 0 : index
    %0 = vector.load %arg3[%c0, %c0_0, %c0_1] : memref<1x4x256xf32, #tpu.memory_space<vmem>>, vector<1x4x256xf32>
    %cst = arith.constant dense<0.000000e+00> : vector<1x4xf32>
    %1 = vector.multi_reduction <add>, %0, %cst [2] : vector<1x4x256xf32> to vector<1x4xf32>
    %2 = vector.shape_cast %1 : vector<1x4xf32> to vector<1x4x1xf32>
    %cst_2 = arith.constant 3.906250e-03 : f32
    %3 = vector.broadcast %cst_2 : f32 to vector<1x4x1xf32>
    %4 = arith.mulf %2, %3 : vector<1x4x1xf32>
    %cst_3 = arith.constant 0.000000e+00 : f32
    %5 = vector.broadcast %cst_3 : f32 to vector<1x1x1xf32>
    %6 = vector.extract_strided_slice %4 {offsets = [0, 0, 0], sizes = [1, 3, 1], strides = [1, 1, 1]} : vector<1x4x1xf32> to vector<1x3x1xf32>
    %7 = tpu.concatenate %5, %6 in 1 : vector<1x1x1xf32>, vector<1x3x1xf32> -> vector<1x4x1xf32>
    %8 = vector.extract_strided_slice %4 {offsets = [0, 1, 0], sizes = [1, 3, 1], strides = [1, 1, 1]} : vector<1x4x1xf32> to vector<1x3x1xf32>
    %9 = tpu.concatenate %8, %5 in 1 : vector<1x3x1xf32>, vector<1x1x1xf32> -> vector<1x4x1xf32>
    %c0_4 = arith.constant 0 : index
    %10 = memref.load %arg1[%c0_4] : memref<3xf32, #tpu.memory_space<smem>>
    %11 = vector.broadcast %10 : f32 to vector<1x4x1xf32>
    %12 = arith.mulf %11, %7 : vector<1x4x1xf32>
    %c1 = arith.constant 1 : index
    %13 = memref.load %arg1[%c1] : memref<3xf32, #tpu.memory_space<smem>>
    %14 = vector.broadcast %13 : f32 to vector<1x4x1xf32>
    %15 = arith.mulf %14, %4 : vector<1x4x1xf32>
    %16 = arith.addf %12, %15 : vector<1x4x1xf32>
    %c2 = arith.constant 2 : index
    %17 = memref.load %arg1[%c2] : memref<3xf32, #tpu.memory_space<smem>>
    %18 = vector.broadcast %17 : f32 to vector<1x4x1xf32>
    %19 = arith.mulf %18, %9 : vector<1x4x1xf32>
    %20 = arith.addf %16, %19 : vector<1x4x1xf32>
    %c0_5 = arith.constant 0 : index
    %21 = memref.load %arg2[%c0_5] : memref<1xf32, #tpu.memory_space<smem>>
    %22 = vector.broadcast %21 : f32 to vector<1x4x1xf32>
    %23 = arith.addf %20, %22 : vector<1x4x1xf32>
    %24 = arith.negf %23 : vector<1x4x1xf32>
    %25 = math.exp %24 : vector<1x4x1xf32>
    %cst_6 = arith.constant 1.000000e+00 : f32
    %26 = vector.broadcast %cst_6 : f32 to vector<1x4x1xf32>
    %27 = arith.addf %26, %25 : vector<1x4x1xf32>
    %28 = arith.divf %26, %27 : vector<1x4x1xf32>
    %c0_7 = arith.constant 0 : index
    %c0_8 = arith.constant 0 : index
    %c0_9 = arith.constant 0 : index
    %29 = vector.load %arg3[%c0_7, %c0_8, %c0_9] : memref<1x4x256xf32, #tpu.memory_space<vmem>>, vector<1x4x256xf32>
    %30 = vector.broadcast %28 : vector<1x4x1xf32> to vector<1x4x256xf32>
    %31 = arith.mulf %29, %30 : vector<1x4x256xf32>
    %c0_10 = arith.constant 0 : index
    %c0_11 = arith.constant 0 : index
    %c0_12 = arith.constant 0 : index
    %32 = vector.load %arg4[%c0_10, %c0_11, %c0_12] : memref<1x4x256xf32, #tpu.memory_space<vmem>>, vector<1x4x256xf32>
    tpu.vector_store %arg4[%c0_10, %c0_11, %c0_12], %31 {strides = array<i32>} : memref<1x4x256xf32, #tpu.memory_space<vmem>>, vector<1x4x256xf32>,
    return
  }
  func.func @transform_0(%arg0: i32) -> i32 {
    %c0_i32 = arith.constant 0 : i32
    %c0_i32_0 = arith.constant 0 : i32
    return %c0_i32 : i32
  }
  func.func @transform_1(%arg0: i32) -> i32 {
    %c0_i32 = arith.constant 0 : i32
    %c0_i32_0 = arith.constant 0 : i32
    return %c0_i32 : i32
  }
  func.func @transform_2(%arg0: i32) -> (i32, i32, i32) {
    %c0_i32 = arith.constant 0 : i32
    %c0_i32_0 = arith.constant 0 : i32
    %c0_i32_1 = arith.constant 0 : i32
    return %arg0, %c0_i32, %c0_i32_0 : i32, i32, i32
  }
  func.func @transform_3(%arg0: i32) -> (i32, i32, i32) {
    %c0_i32 = arith.constant 0 : i32
    %c0_i32_0 = arith.constant 0 : i32
    %c0_i32_1 = arith.constant 0 : i32
    return %arg0, %c0_i32, %c0_i32_0 : i32, i32, i32
  }
}

</mosaic_0001>

<bundles_post_ra>
// kernel: tpu_custom_call.1
= control target key start
LH: loop header
LB: loop body
LE: loop exit
PB: predicated region body
PF: predicated region fallthrough
CT: control target
= control target key end

     0   :  { %s744_s0 = inlined_call_operand.vmem [shape: f32[3], index: 0, kind: input, shape index: {}]   ;;  %s745_s1 = inlined_call_operand.<no memory space> [shape: f32[1], index: 1, kind: input, shape index: {}]   ;;  %s746_s2 = inlined_call_operand.hbm [shape: f32[2,4,256], index: 2, kind: input, shape index: {}]   ;;  %s747_s3 = inlined_call_operand.hbm [shape: f32[2,4,256], index: 3, kind: output, shape index: {}]  }
   0x1   :  { %8 = sst [smem:[#allocation2]] %s745_s1 }
   0x2   :  { %9 = vsyncpa [#allocation6], 0 }
   0x3   :  { %10 = vsyncpa [#allocation4], 0 }
   0x4   :  { %12 = vsyncpa [#allocation4 + $0x1], 0 }
   0x5   :  { %13 = vsyncpa [#allocation5], 0 }
   0x6   :  { %15 = vsyncpa [#allocation5 + $0x1], 0  ;;  %s598_s14 = smov 0   ;;  %s600_s15 = smov 0  }
   0x7   :  { %s602_s16 = smov 0   ;;  %s604_s17 = smov 0  }
   0x8 LB: > { %s619_s1 = sadd.s32 4294967295, %s570_s17   ;;  %s370_s18 = sadd.s32 4294967294, %s570_s17   ;;  %s570_s17 = sphi %s604_s17, %s757_s17   ;;  %s566_s16 = sphi %s602_s16, %s756_s16   ;;  %s562_s15 = sphi %s600_s15, %s755_s15   ;;  %s558_s14 = sphi %s598_s14, %s754_s14  }
   0x9   : > { %p83_p0 = scmp.ne.s32.totalorder %s562_s15, %s558_s14  ;;  %p84_p1 = scmp.eq.s32.totalorder %s619_s1, 0 }
   0xa   : > { %p107_p2 = scmp.eq.s32.totalorder %s619_s1, 1  ;;  %p113_p3 = scmp.eq.s32.totalorder %s370_s18, 1 }
   0xb   : > { %p628_p4 = por %p84_p1, %p83_p0  ;;  %p371_p5 = scmp.ge.s32.totalorder %s570_s17, 1 }
   0xc   : > { %p633_p6 = por %p113_p3, %p83_p0  ;;  %p120_p7 = scmp.lt.s32.totalorder %s570_s17, 3 }
   0xd   : > { %s132_s23 = sshll.u32 %s744_s0, 4  ;;  %s649_s25 = sadd.s32 1, %s570_s17   ;;  %s133_s23 = int_to_ptr.vmem [resolvable:$true] %s132_s23 }
   0xe   : > { %p641_p8 = pnand %p371_p5, %p120_p7  ;;  %s67_s26 = ssub.s32 %s570_s17, %s649_s25 }
   0xf   : > { %p68_p12 = scmp.eq.s32.totalorder %s67_s26, 0  ;;  %s70_s27 = sadd.s32 1, %s566_s16 }
  0x10   : > { %p399_p10 = pneg %p641_p8  ;;  %p77_p13 = scmp.ne.s32.totalorder %s566_s16, %s562_s15 }
  0x11   : > { %s572_s28 = smov [#allocation3]   ;;  %p78_p0 = scmp.eq.s32.totalorder %s570_s17, 0 }
  0x12   : > { %p400_p11 = pnand %p399_p10, %p84_p1  ;;  %p664_p3 = por %p107_p2, %p77_p13 }
  0x13   : > { %s659_s29 = scalar_select %p68_p12, %s566_s16, %s70_s27  }
  0x14   : > { %402 = dma.vmem_to_smem (!%p400_p11), %s133_s23, 16, %s572_s28, [#allocation6]  }
  0x15   : > { %s146_s4 = sand.u32 1, %s566_s16   ;;  %p79_p5 = por %p78_p0, %p77_p13 }
  0x16   : > { %p412_p7 = scmp.lt.s32.totalorder %s570_s17, 2  ;;  %s374_s5 = sshll.u32 %s146_s4, 3 }
  0x17   : > { %s389_s6 = sshll.u32 %s570_s17, 3  ;;  %s150_s11 = scalar_lea.vmem [#allocation7], %s374_s5 }
  0x18   : > { %s155_s9 = scalar_lea.hbm %s746_s2, %s389_s6  ;;  %s159_s12 = sshll.u32 %s150_s11, 4  ;;  %s160_s12 = int_to_ptr.vmem [resolvable:$true] %s159_s12 }
  0x19   : > { %s157_s10 = sshll.u32 %s155_s9, 4  ;;  %p674_p10 = pnand %p412_p7, %p79_p5  ;;  %s158_s10 = int_to_ptr.hbm [resolvable:$true] %s157_s10 }
  0x1a   : > { %s147_s18 = scalar_lea.sflag [#allocation4], %s146_s4  ;;  %s470_s21 = sshra.s32 %s158_s10, 4  ;;  %s471_s21 = int_to_ptr.hbm [resolvable:$true] %s470_s21 }
  0x1b   : > { %s472_s22 = scalar_lea.hbm %s471_s21, 8  ;;  %p474_p11 = pneg %p674_p10 }
  0x1c   : > { %p473_p2 = scmp.ne.s32.totalorder %s471_s21, %s472_s22  ;;  %s477_s27 = scalar_lea.hbm %s746_s2, 16 }
  0x1d   : > { %p478_p0 = scmp.lt.s32.totalorder %s471_s21, %s746_s2  ;;  %p479_p5 = scmp.lt.s32.totalorder %s477_s27, %s472_s22 }
  0x1e   : > { %p475_p12 = pnand %p474_p11, %p473_p2 }
  0x1f   : > { %p480_p7 = por %p479_p5, %p478_p0 }
  0x20   : > { %p476_p13 = pneg %p475_p12 }
  0x22   : > { %p481_p9 = pnand %p480_p7, %p476_p13 }
  0x24   : > { %484 = shalt.err (!%p481_p9)
}
  0x25   : > { %406 = dma.hbm_to_vmem [thread:$0]  (!%p674_p10), %s158_s10, 128, %s160_s12, %s147_s18  }
  0x26   : > { %168 = sbr.rel (%p641_p8) target bundleno = 341 (0x155), region = 32 }
  0x2b   : > { %545 = dma.done.wait (%p84_p1), [#allocation6], 16  }
  0x2c   : > { %547 = vsyncadd (%p84_p1), [#allocation6], 4294967280  ;;  %s695_s4 = sand.u32 1, %s562_s15  }
  0x2d   : > { %s379_s6 = sshll.u32 %s695_s4, 3  ;;  %s176_s7 = scalar_lea.sflag [#allocation4], %s695_s4 }
  0x2e   : > { %s179_s8 = scalar_lea.vmem [#allocation7], %s379_s6 }
  0x2f   : > { %549 = dma.done.wait (%p628_p4), %s176_s7, 128  }
  0x30   : > { %551 = vsyncadd (%p628_p4), %s176_s7, 4294967168 }
  0x31   : > { %185 = sfence }
  0x32   : > { %v705_v0 = vld [vmem:[%s179_s8] sm:$0xff]  ;;  %vm211_vm0 = vcmask 1043456   ;;  %s227_s24 = sld [smem:[#allocation3]]  ;;  %v573_v6 = vmov 0   ;;  %vm221_vm1 = vcmask 1040384   ;;  %vm225_vm2 = vcmask 1042432  }
  0x33   : > { %206 = vst [vmem:[#allocation1] ss:$2 sm:$0xff] %v705_v0  ;;  %450 = vset.pattern.permute.xlu0 %v573_v6  ;;  %s381_s9 = sld [smem:[#allocation3 + $0x1]]  ;;  %v574_v36 = vmov 839922192   ;;  %s390_s11 = sshll.u32 %s619_s1, 3 }
  0x34   : > { %s382_s10 = sld [smem:[#allocation3 + $0x2]]  ;;  %v265_v37 = vunpack.c.l.s4 %v574_v36  ;;  %s283_s18 = scalar_lea.hbm %s747_s3, %s390_s11 }
  0x35   : > { %s238_s19 = sld [smem:[#allocation2]]  ;;  %s203_s21 = scalar_lea.vmem [#allocation8], %s379_s6 }
  0x36   : > { %v266_v38 = vunpack.c.0.s8 %v265_v37  ;;  %s285_s22 = sshll.u32 %s203_s21, 4  ;;  %s287_s23 = sshll.u32 %s283_s18, 4  ;;  %s286_s22 = int_to_ptr.vmem [resolvable:$true] %s285_s22  ;;  %s288_s23 = int_to_ptr.hbm [resolvable:$true] %s287_s23 }
  0x37   : > { %s272_s26 = scalar_lea.sflag [#allocation5], %s695_s4  ;;  %s514_s27 = sshra.s32 %s288_s23, 4  ;;  %s515_s27 = int_to_ptr.hbm [resolvable:$true] %s514_s27 }
  0x38   : > { %v228_v9 = vstv %s227_s24  ;;  %s516_s1 = scalar_lea.hbm %s515_s27, 8  ;;  %s520_s6 = scalar_lea.hbm %s747_s3, 16 }
  0x39   : > { %v231_v10 = vstv %s381_s9  ;;  %p517_p1 = scmp.ne.s32.totalorder %s515_s27, %s516_s1  ;;  %p521_p9 = scmp.lt.s32.totalorder %s515_s27, %s747_s3 }
  0x3a   : > { %v207_v1 = vld.sshfl [vmem:[#allocation1] sm:$0xff pattern:$0x75316420]  ;;  %v208_v2 = vld.sshfl [vmem:[#allocation1 + $0x8] sm:$0xff pattern:$0x75316420]  ;;  %v235_v13 = vstv %s382_s10  ;;  %p522_p10 = scmp.lt.s32.totalorder %s520_s6, %s516_s1 }
  0x3b   : > { %v212_v3 = vsel %vm211_vm0, %v207_v1, 0.0  ;;  %v213_v4 = vsel %vm211_vm0, %v208_v2, 0.0  ;;  %v239_v20 = vstv %s238_s19  ;;  %p518_p4 = pnand %p517_p1, %p664_p3 }
  0x3c   : > { %v214_v5 = vadd.f32 %v213_v4, %v212_v3  ;;  %p523_p2 = por %p522_p10, %p521_p9 }
  0x3d   : > { %p519_p8 = pneg %p518_p4 }
  0x3e   : > { %215 = vadd.xlane.f32.xlu0 %v214_v5 }
  0x3f   : > { %p524_p11 = pnand %p523_p2, %p519_p8 }
  0xb1   : > { %v216_v7 = vpop.xlane.xlu0 %215 }
  0xb2   : > { %v217_v8 = vmul.f32 0.00390625, %v216_v7 }
  0xb4   : > { %v219_v11 = vrot.slane %v217_v8, 7  ;;  %v223_v12 = vrot.slane %v217_v8, 1  ;;  %v232_v17 = vmul.f32 %v231_v10, %v217_v8 }
  0xb6   : > { %v222_v14 = vsel %vm221_vm1, 0.0, %v219_v11  ;;  %v226_v15 = vsel %vm225_vm2, %v223_v12, 0.0 }
  0xb7   : > { %v229_v16 = vmul.f32 %v228_v9, %v222_v14  ;;  %v236_v19 = vmul.f32 %v235_v13, %v226_v15 }
  0xb9   : > { %v233_v18 = vadd.f32 %v232_v17, %v229_v16 }
  0xbb   : > { %v237_v21 = vadd.f32 %v236_v19, %v233_v18 }
  0xbd   : > { %v240_v22 = vadd.f32 %v239_v20, %v237_v21 }
  0xbf   : > { %v383_v23 = vmul.f32 -1.442695, %v240_v22 }
  0xc1   : > { %451 = vpow2.f32 %v383_v23 }
  0xc7   : > { %v452_v24 = vpop.eup %451 }
  0xc8   : > { %v244_v25 = vadd.f32 1.0, %v452_v24 }
  0xca   : > { %453 = vrcp.f32 %v244_v25  ;;  %v256_v29 = vand.u32 2147483648, %v244_v25  ;;  %v254_v31 = vand.u32 2147483647, %v244_v25  ;;  %vm250_vm4 = vweird.f32 %v244_v25 }
  0xcc   : > { %v257_v33 = vor.u32 1.1754944e-38, %v256_v29  ;;  %vm255_vm6 = vcmp.eq.f32.partialorder %v254_v31, 8.507059e+37 }
  0xd0   : > { %v454_v26 = vpop.eup %453 }
  0xd1   : > { %v246_v27 = vmul.f32 %v454_v26, %v244_v25  ;;  %vm251_vm3 = vweird.f32 %v454_v26 }
  0xd2   : > { %vm252_vm5 = vmor %vm250_vm4, %vm251_vm3 }
  0xd3   : > { %v247_v28 = vsub.f32 1.0, %v246_v27 }
  0xd5   : > { %v248_v30 = vmul.f32 %v454_v26, %v247_v28 }
  0xd7   : > { %v249_v32 = vadd.f32 %v454_v26, %v248_v30 }
  0xd9   : > { %v253_v34 = vsel %vm252_vm5, %v454_v26, %v249_v32 }
  0xda   : > { %v258_v35 = vsel %vm255_vm6, %v257_v33, %v253_v34 }
  0xdb   : > { %262 = vperm.xlu0 %450, %v258_v35  }
 0x14d   : > { %v263_v39 = vpop.permute.xlu0 %262 }
 0x14e   : > { %v267_v40 = vperm.slane %v263_v39, %v266_v38 }
 0x150   : > { %v269_v41 = vmul.f32 %v267_v40, %v705_v0 }
 0x152   : > { %270 = vst [vmem:[%s203_s21] sm:$0xff] %v269_v41 }
 0x153   : > { %527 = shalt.err (!%p524_p11)
}
 0x154   : > { %397 = dma.vmem_to_hbm [thread:$0]  (%p664_p3), %s286_s22, 128, %s288_s23, %s272_s26  }
 0x155 PF: > { %s299_s4 = sand.u32 1, %s558_s14   ;;  %p753_p12 = scmp.ge.s32.totalorder %s570_s17, 2 }
 0x156   : > { %s300_s24 = scalar_lea.sflag [#allocation5], %s299_s4 }
 0x157   : > { %p408_p13 = pnand %p753_p12, %p633_p6 }
 0x159   : > { %p409_p0 = pneg %p408_p13 }
 0x15b   : > { %553 = dma.done.wait (%p409_p0), %s300_s24, 128  }
 0x15c   : > { %555 = vsyncadd (%p409_p0), %s300_s24, 4294967168  ;;  %p18_p5 = scmp.ge.s32.totalorder %s649_s25, 4   ;;  %s754_s14 = smov %s562_s15 }
 0x15d   : > { %s755_s15 = smov %s566_s16  ;;  %s756_s16 = smov %s659_s29 }
 0x15e   : > { %s757_s17 = smov %s649_s25  ;;  %20 = sbr.rel (!%p18_p5) target bundleno = 8 (0x8), region = 82 }
 0x163   :  { %306 = vsyncpa [#allocation4], 1 }
 0x164   :  { %308 = vsyncpa [#allocation4 + $0x1], 1 }
 0x165   :  { %309 = vsyncpa [#allocation5], 1 }
 0x166   :  { %311 = vsyncpa [#allocation5 + $0x1], 1 }
 0x167   :  { %312 = vsyncpa [#allocation6], 1 }
 0x168   :  { %314 = vsyncpa [#allocation6 + $0x1], 1 }

</bundles_post_ra>
